<compile_context>
chip_gen: v6e
topology: v6e:2x2x1
jax: 0.10.0
libtpu: 0.0.40
codegen_flags: <defaults>
</compile_context>

<pallas_src>
import functools

import jax
import jax.numpy as jnp
from jax.experimental import pallas as pl
from jax.experimental.pallas import tpu as pltpu

_LANES = 128
_MAX_BLOCK_ROWS = 8192            # 8192 * 128 * 4 B = 4 MiB per f32 block (two-pass path)


def _round_up(n, m):
    return (n + m - 1) // m * m


# --------------------------- per-chip VMEM budgets ---------------------------


@functools.lru_cache(maxsize=None)
def _vmem_capacity_bytes():
    """Physical VMEM per TensorCore (v5e/v6e: 128 MiB, v7x: 64 MiB)."""
    try:
        return int(pltpu.get_tpu_info().vmem_capacity_bytes)
    except Exception:
        return 64 << 20                          # conservative (v7x per-core) fallback


def _vmem_limit_bytes():
    # Scoped-VMEM limit requested for our calls; leaves headroom for compiler scratch.
    return min(_vmem_capacity_bytes() * 3 // 4, 96 << 20)


def _fused_budget_bytes():
    # Budget for the single-call fully-resident path (input + output + temps).
    return _vmem_limit_bytes() * 2 // 3


def _two_pass_vmem_limit_bytes():
    # in + out double-buffered 4 MiB blocks + small scratch.
    return min(40 << 20, _vmem_limit_bytes())


# ------------------- fused single-call path (slab fits VMEM) -----------------


def _kbit_fused_kernel(x_ref, o_ref, *, n_levels, two_inv_n):
    t = jnp.tanh(x_ref[...].astype(jnp.float32))
    m = jnp.max(jnp.abs(t), axis=0, keepdims=True)          # (1, 128)
    m = jnp.max(m, axis=1, keepdims=True)                    # (1, 1) = max|tanh(x)|
    a = (0.5 * n_levels) / m                                 # (1, 1) folded scale
    w = t * a + (0.5 * n_levels)                             # FMA with (1,1) broadcast
    o_ref[...] = (jnp.round(w) * two_inv_n - 1.0).astype(o_ref.dtype)


def _sign_fused_kernel(x_ref, o_ref, *, inv_n_true):
    x = x_ref[...].astype(jnp.float32)
    s = jnp.sum(jnp.abs(x), axis=0, keepdims=True)           # (1, 128)
    e = jnp.sum(s, axis=1, keepdims=True) * inv_n_true       # (1, 1) = mean|x|
    # sign(x / E) * E == sign(x) * E for E > 0 (E == 0 degenerate either way).
    o_ref[...] = (jnp.sign(x) * e).astype(o_ref.dtype)


def _fused_call(kernel, x2d, out_dtype, *, transcendental):
    n = x2d.size
    return pl.pallas_call(
        kernel,
        out_shape=jax.ShapeDtypeStruct(x2d.shape, out_dtype),
        in_specs=[pl.BlockSpec(memory_space=pltpu.MemorySpace.VMEM)],
        out_specs=pl.BlockSpec(memory_space=pltpu.MemorySpace.VMEM),
        compiler_params=pltpu.CompilerParams(
            vmem_limit_bytes=_vmem_limit_bytes()),
        cost_estimate=pl.CostEstimate(
            flops=7 * n,
            transcendentals=(n if transcendental else 0),
            bytes_accessed=n * 4 + n * jnp.dtype(out_dtype).itemsize),
    )(x2d)


# ------------------ pass 1 (tiled): global max|x| / sum|x| -------------------


def _max_abs_kernel(x_ref, o_ref, acc_ref, *, rows, block_rows):
    i = pl.program_id(0)

    @pl.when(i == 0)
    def _():
        acc_ref[...] = jnp.zeros_like(acc_ref)    # max|x| >= 0, so 0 is neutral
        o_ref[...] = jnp.zeros_like(o_ref)

    x = jnp.abs(x_ref[...].astype(jnp.float32))
    if rows % block_rows:                         # static: ragged last block possible
        r = jax.lax.broadcasted_iota(jnp.int32, x.shape, 0) + i * block_rows
        x = jnp.where(r < rows, x, 0.0)
    # VPU-only partial combine into an (8,128) accumulator; the cross-lane
    # reduce happens once, on the last grid step.
    part = jnp.max(x.reshape(block_rows // 8, 8, _LANES), axis=0)
    acc_ref[...] = jnp.maximum(acc_ref[...], part)

    @pl.when(i == pl.num_programs(0) - 1)
    def _():
        o_ref[...] = jnp.maximum(o_ref[...], jnp.max(acc_ref[...]))


def _sum_abs_kernel(x_ref, o_ref, acc_ref, *, rows, block_rows):
    i = pl.program_id(0)

    @pl.when(i == 0)
    def _():
        acc_ref[...] = jnp.zeros_like(acc_ref)
        o_ref[...] = jnp.zeros_like(o_ref)

    x = jnp.abs(x_ref[...].astype(jnp.float32))
    if rows % block_rows:
        r = jax.lax.broadcasted_iota(jnp.int32, x.shape, 0) + i * block_rows
        x = jnp.where(r < rows, x, 0.0)
    acc_ref[...] += jnp.sum(x.reshape(block_rows // 8, 8, _LANES), axis=0)

    @pl.when(i == pl.num_programs(0) - 1)
    def _():
        o_ref[...] += jnp.sum(acc_ref[...])


def _reduce(x2d, kernel_body, block_rows):
    rows = x2d.shape[0]
    grid = pl.cdiv(rows, block_rows)
    n = x2d.size
    kernel = functools.partial(kernel_body, rows=rows, block_rows=block_rows)
    return pl.pallas_call(
        kernel,
        out_shape=jax.ShapeDtypeStruct((1, 1), jnp.float32),
        grid_spec=pltpu.PrefetchScalarGridSpec(
            num_scalar_prefetch=0,
            grid=(grid,),
            in_specs=[pl.BlockSpec((block_rows, _LANES), lambda i: (i, 0))],
            out_specs=pl.BlockSpec((1, 1), lambda i: (0, 0)),
            scratch_shapes=[pltpu.VMEM((8, _LANES), jnp.float32)],
        ),
        compiler_params=pltpu.CompilerParams(
            dimension_semantics=("arbitrary",),
            vmem_limit_bytes=_two_pass_vmem_limit_bytes()),
        cost_estimate=pl.CostEstimate(
            flops=2 * n, transcendentals=0, bytes_accessed=n * 4 + 4),
    )(x2d)


# ----------------------- pass 2 (tiled): elementwise apply -------------------


def _kbit_apply_kernel(a_ref, x_ref, o_ref, *, n_levels, two_inv_n):
    a = a_ref[0, 0]                    # SMEM scalar: 0.5 * n / tanh(max|x|)
    w = jnp.tanh(x_ref[...].astype(jnp.float32)) * a + (0.5 * n_levels)
    o_ref[...] = (jnp.round(w) * two_inv_n - 1.0).astype(o_ref.dtype)


def _sign_apply_kernel(e_ref, x_ref, o_ref):
    e = e_ref[0, 0]                    # SMEM scalar: mean|x|
    x = x_ref[...].astype(jnp.float32)
    o_ref[...] = (jnp.sign(x) * e).astype(o_ref.dtype)


def _apply(kernel, stat11, x2d, out_dtype, block_rows, *, transcendental):
    rows = x2d.shape[0]
    grid = pl.cdiv(rows, block_rows)
    n = x2d.size
    return pl.pallas_call(
        kernel,
        out_shape=jax.ShapeDtypeStruct(x2d.shape, out_dtype),
        grid_spec=pltpu.PrefetchScalarGridSpec(
            num_scalar_prefetch=0,
            grid=(grid,),
            in_specs=[
                pl.BlockSpec(memory_space=pltpu.MemorySpace.SMEM),      # (1,1) scalar
                pl.BlockSpec((block_rows, _LANES), lambda i: (i, 0)),
            ],
            out_specs=pl.BlockSpec((block_rows, _LANES), lambda i: (i, 0)),
        ),
        compiler_params=pltpu.CompilerParams(
            dimension_semantics=("parallel",),    # 2 TCs on v7x; no-op on v5e/v6e
            vmem_limit_bytes=_two_pass_vmem_limit_bytes()),
        cost_estimate=pl.CostEstimate(
            flops=5 * n,
            transcendentals=(n if transcendental else 0),
            bytes_accessed=n * 4 + n * jnp.dtype(out_dtype).itemsize),
    )(stat11, x2d)


# ------------------------------------ wrapper --------------------------------


def weight_quantize_fn(x, w_bit, *, _force_two_pass=False, _block_rows=None):
    """DoReFa weight quantization forward (matches the PyTorch module)."""
    assert w_bit <= 8 or w_bit == 32

    if w_bit == 32:
        return x                                   # identity: no kernel launch

    orig_shape = x.shape
    orig_dtype = x.dtype
    n_true = x.size

    # Lane-dense slab: flatten into (rows, 128); pad only if n % 128 != 0.
    flat = x.reshape(-1)
    rows = -(-n_true // _LANES)
    padded = rows * _LANES != n_true
    if padded:
        flat = jnp.pad(flat, (0, rows * _LANES - n_true))   # zeros: neutral for both stats
    x2d = flat.reshape(rows, _LANES)

    n_levels = float(2 ** w_bit - 1) if w_bit > 1 else 1.0
    two_inv_n = 2.0 / n_levels
    out_itemsize = jnp.dtype(orig_dtype).itemsize

    # ---- fused single-call path: whole slab resident in VMEM ----
    resident_bytes = rows * _LANES * (4 + out_itemsize + 8)   # x as f32 + out + temps
    if (not _force_two_pass) and resident_bytes <= _fused_budget_bytes():
        if w_bit == 1:
            kern = functools.partial(_sign_fused_kernel, inv_n_true=1.0 / n_true)
            out2d = _fused_call(kern, x2d, orig_dtype, transcendental=False)
        else:
            kern = functools.partial(_kbit_fused_kernel,
                                     n_levels=n_levels, two_inv_n=two_inv_n)
            out2d = _fused_call(kern, x2d, orig_dtype, transcendental=True)
    else:
        # ---- two-pass tiled path (slab too large for VMEM) ----
        block_rows = _block_rows if _block_rows is not None else _MAX_BLOCK_ROWS
        block_rows = max(8, _round_up(min(block_rows, _round_up(rows, 8)), 8))
        if w_bit == 1:
            sum_abs = _reduce(x2d, _sum_abs_kernel, block_rows)         # (1,1) f32
            e11 = sum_abs * jnp.float32(1.0 / n_true)                   # mean over real elems
            out2d = _apply(_sign_apply_kernel, e11, x2d, orig_dtype,
                           block_rows, transcendental=False)
        else:
            max_abs = _reduce(x2d, _max_abs_kernel, block_rows)         # (1,1) f32
            # max|tanh(x)| == tanh(max|x|): one scalar tanh instead of a tanh pass.
            a11 = jnp.float32(0.5 * n_levels) / jnp.tanh(max_abs)
            kern = functools.partial(_kbit_apply_kernel,
                                     n_levels=n_levels, two_inv_n=two_inv_n)
            out2d = _apply(kern, a11, x2d, orig_dtype,
                           block_rows, transcendental=True)

    if padded:
        return out2d.reshape(-1)[:n_true].reshape(orig_shape)
    return out2d.reshape(orig_shape)


# --------------------------------- reference ---------------------------------


def weight_quantize_ref(x, w_bit):
    if w_bit == 32:
        return x
    if w_bit == 1:
        e = jnp.mean(jnp.abs(x))
        return jnp.sign(x / e) * e
    n = float(2 ** w_bit - 1)
    w = jnp.tanh(x)
    w = w / 2.0 / jnp.max(jnp.abs(w)) + 0.5
    q = jnp.round(w * n) / n
    return 2.0 * q - 1.0


# ------------------------------------ main ------------------------------------


if __name__ == "__main__":
    key = jax.random.PRNGKey(0)
    k1, k2, k3 = jax.random.split(key, 3)

    # Conv-style weights: one lane-aligned slab and one that needs padding.
    tests = [
        jax.random.normal(k1, (16, 8, 4, 4), dtype=jnp.float32),   # 2048 elems
        jax.random.normal(k2, (8, 3, 3, 3), dtype=jnp.float32),    # 216 elems
    ]

    ok = True
    for x in tests:
        for w_bit in (4, 2, 1, 32):
            out = weight_quantize_fn(x, w_bit)
            jax.block_until_ready(out)
            ref = weight_quantize_ref(x, w_bit)
            good = (out.shape == x.shape and
                    bool(jnp.allclose(out, ref, atol=1e-5, rtol=1e-5)))
            if not good:
                ok = False
                print("MISMATCH (fused) shape=%s w_bit=%d max_err=%s" % (
                    x.shape, w_bit, jnp.max(jnp.abs(out - ref))))

    # Exercise the two-pass tiled path (normally only used for slabs that exceed
    # the VMEM budget) with a small forced block size: ragged row count, ragged
    # last block, SMEM scalar, (8,128) scratch accumulator.
    xb = jax.random.normal(k3, (48, 130), dtype=jnp.float32)       # 6240 elems
    for w_bit in (4, 2, 1):
        out = weight_quantize_fn(xb, w_bit, _force_two_pass=True, _block_rows=16)
        jax.block_until_ready(out)
        ref = weight_quantize_ref(xb, w_bit)
        good = (out.shape == xb.shape and
                bool(jnp.allclose(out, ref, atol=1e-5, rtol=1e-5)))
        if not good:
            ok = False
            print("MISMATCH (two-pass) w_bit=%d max_err=%s" % (
                w_bit, jnp.max(jnp.abs(out - ref))))

    if ok:
        print("KERNEL_OK")
</pallas_src>

<mosaic_0001>
module attributes {stable_mosaic.version = 11 : i64} {
  func.func @_kbit_fused_kernel(%arg0: memref<16x128xf32, #tpu.memory_space<vmem>>, %arg1: memref<16x128xf32, #tpu.memory_space<vmem>>) attributes {dimension_semantics = [], scalar_prefetch = 0 : i64, scratch_operands = 0 : i64, tpu.core_type = #tpu.core_type<tc>} {
    %c0 = arith.constant 0 : index
    %c0_0 = arith.constant 0 : index
    %0 = vector.load %arg0[%c0, %c0_0] : memref<16x128xf32, #tpu.memory_space<vmem>>, vector<16x128xf32>
    %1 = math.tanh %0 : vector<16x128xf32>
    %2 = math.absf %1 : vector<16x128xf32>
    %cst = arith.constant dense<0xFF800000> : vector<128xf32>
    %3 = vector.multi_reduction <maximumf>, %2, %cst [0] : vector<16x128xf32> to vector<128xf32>
    %4 = vector.shape_cast %3 : vector<128xf32> to vector<1x128xf32>
    %cst_1 = arith.constant dense<0xFF800000> : vector<1xf32>
    %5 = vector.multi_reduction <maximumf>, %4, %cst_1 [1] : vector<1x128xf32> to vector<1xf32>
    %6 = vector.shape_cast %5 : vector<1xf32> to vector<1x1xf32>
    %cst_2 = arith.constant 7.500000e+00 : f32
    %7 = vector.broadcast %cst_2 : f32 to vector<1x1xf32>
    %8 = arith.divf %7, %6 : vector<1x1xf32>
    %9 = vector.broadcast %8 : vector<1x1xf32> to vector<16x128xf32>
    %10 = arith.mulf %1, %9 : vector<16x128xf32>
    %cst_3 = arith.constant 7.500000e+00 : f32
    %11 = vector.broadcast %cst_3 : f32 to vector<16x128xf32>
    %12 = arith.addf %10, %11 : vector<16x128xf32>
    %13 = math.roundeven %12 : vector<16x128xf32>
    %cst_4 = arith.constant 0.13333334 : f32
    %14 = vector.broadcast %cst_4 : f32 to vector<16x128xf32>
    %15 = arith.mulf %13, %14 : vector<16x128xf32>
    %cst_5 = arith.constant 1.000000e+00 : f32
    %16 = vector.broadcast %cst_5 : f32 to vector<16x128xf32>
    %17 = arith.subf %15, %16 : vector<16x128xf32>
    %c0_6 = arith.constant 0 : index
    %c0_7 = arith.constant 0 : index
    %18 = vector.load %arg1[%c0_6, %c0_7] : memref<16x128xf32, #tpu.memory_space<vmem>>, vector<16x128xf32>
    tpu.vector_store %arg1[%c0_6, %c0_7], %17 {strides = array<i32>} : memref<16x128xf32, #tpu.memory_space<vmem>>, vector<16x128xf32>,
    return
  }
}

</mosaic_0001>

<bundles_post_ra>
// kernel: tpu_custom_call.1
= control target key start
LH: loop header
LB: loop body
LE: loop exit
PB: predicated region body
PF: predicated region fallthrough
CT: control target
= control target key end

     0   :  { %6 = vsyncpa [#allocation3], 0  ;;  %s167_s0 = inlined_call_operand.hbm [shape: f32[16,128], index: 0, kind: input, shape index: {}]   ;;  %s168_s1 = inlined_call_operand.hbm [shape: f32[16,128], index: 1, kind: output, shape index: {}]  }
   0x1   :  { %7 = vsyncpa [#allocation4], 0  ;;  %s141_s6 = smov [#allocation2]  }
   0x2   :  { %s13_s7 = sshll.u32 %s141_s6, 4  ;;  %s14_s7 = int_to_ptr.vmem [resolvable:$true] %s13_s7 }
   0x3   :  { %s105_s8 = scalar_lea.vmem %s14_s7, 256  ;;  %p110_p1 = scmp.lt.s32.totalorder %s14_s7, %s14_s7 }
   0x4   :  { %p106_p0 = scmp.ne.s32.totalorder %s14_s7, %s105_s8  ;;  %p111_p2 = scmp.lt.s32.totalorder %s105_s8, %s105_s8 }
   0x6   :  { %p112_p3 = por %p111_p2, %p110_p1 }
   0x8   :  { %p113_p4 = pnand %p112_p3, %p106_p0 }
   0xa   :  { %116 = shalt.err (!%p113_p4)
}
   0xb   :  { %s142_s9 = smov 128   ;;  %s143_s10 = smov 8  }
   0xc   :  { %19 = dma.hbm_to_vmem [thread:$0]  %s167_s0, 256, %s14_s7, [#allocation3], %s142_s9, %s142_s9, %s143_s10  }
   0xd   :  { %137 = dma.done.wait [#allocation3], 256  }
   0xe   :  { %138 = vsyncadd [#allocation3], 4294967040  ;;  %v23_v0 = vld [vmem:[#allocation2] sm:$0xff]  ;;  %v24_v1 = vld [vmem:[#allocation2 + $0x8] sm:$0xff]  ;;  %s144_s0 = smov [#allocation5]  }
   0xf   :  { %91 = vtanh.f32 %v23_v0  ;;  %s57_s13 = sshll.u32 %s144_s0, 4  ;;  %s58_s13 = int_to_ptr.vmem [resolvable:$true] %s57_s13 }
  0x10   :  { %93 = vtanh.f32 %v24_v1  ;;  %s117_s14 = scalar_lea.vmem %s58_s13, 256  ;;  %p122_p6 = scmp.lt.s32.totalorder %s58_s13, %s58_s13 }
  0x11   :  { %p118_p5 = scmp.ne.s32.totalorder %s58_s13, %s117_s14  ;;  %p123_p7 = scmp.lt.s32.totalorder %s117_s14, %s117_s14 }
  0x13   :  { %p124_p8 = por %p123_p7, %p122_p6 }
  0x15   :  { %p125_p9 = pnand %p124_p8, %p118_p5 }
  0x1c   :  { %v92_v2 = vpop.eup %91 }
  0x1d   :  { %v94_v3 = vpop.eup %93  ;;  %v27_v4 = vand.u32 2147483647, %v92_v2 }
  0x1e   :  { %v28_v5 = vand.u32 2147483647, %v94_v3 }
  0x20   :  { %v29_v6 = vmax.f32.f32 %v27_v4, %v28_v5 }
  0x22   :  { %v30_v7 = vrot.slane %v29_v6, 4 }
  0x24   :  { %v31_v8 = vmax.f32 %v29_v6, %v30_v7 }
  0x26   :  { %v32_v9 = vrot.slane %v31_v8, 2 }
  0x28   :  { %v33_v10 = vmax.f32 %v31_v8, %v32_v9 }
  0x2a   :  { %v34_v11 = vrot.slane %v33_v10, 1 }
  0x2c   :  { %v35_v12 = vmax.f32 %v33_v10, %v34_v11 }
  0x2e   :  { %36 = vmax.xlane.f32.xlu0 %v35_v12 }
  0xb7   :  { %v37_v13 = vpop.xlane.xlu0 %36 }
  0xb8   :  { %95 = vrcp.f32 %v37_v13 }
  0xc5   :  { %v96_v14 = vpop.eup %95 }
  0xc6   :  { %v39_v15 = vmul.f32 7.5, %v96_v14 }
  0xc8   :  { %v40_v16 = vmul.f32 %v92_v2, %v39_v15  ;;  %v41_v17 = vmul.f32 %v94_v3, %v39_v15 }
  0xca   :  { %v42_v18 = vadd.f32 7.5, %v40_v16  ;;  %v43_v19 = vadd.f32 7.5, %v41_v17 }
  0xcc   :  { %v73_v20 = vcvt.f32.s32 %v42_v18  ;;  %v81_v21 = vcvt.f32.s32 %v43_v19  ;;  %v71_v23 = vand.u32 2147483647, %v42_v18  ;;  %v76_v26 = vand.u32 2147483648, %v42_v18 }
  0xcd   :  { %v79_v27 = vand.u32 2147483647, %v43_v19  ;;  %v84_v29 = vand.u32 2147483648, %v43_v19 }
  0xce   :  { %v74_v22 = vcvt.s32.f32 %v73_v20  ;;  %v82_v24 = vcvt.s32.f32 %v81_v21  ;;  %vm72_vm0 = vcmp.lt.f32.partialorder %v71_v23, 8388608.0 }
  0xcf   :  { %vm80_vm1 = vcmp.lt.f32.partialorder %v79_v27, 8388608.0 }
  0xd0   :  { %v75_v25 = vand.u32 2147483647, %v74_v22  ;;  %v83_v28 = vand.u32 2147483647, %v82_v24 }
  0xd2   :  { %v77_v30 = vor.u32 %v76_v26, %v75_v25  ;;  %v85_v31 = vor.u32 %v84_v29, %v83_v28 }
  0xd4   :  { %v78_v32 = vsel %vm72_vm0, %v77_v30, %v42_v18  ;;  %v86_v33 = vsel %vm80_vm1, %v85_v31, %v43_v19 }
  0xd5   :  { %v46_v34 = vmul.f32 0.13333334, %v78_v32  ;;  %v47_v35 = vmul.f32 0.13333334, %v86_v33 }
  0xd7   :  { %v69_v36 = vadd.f32 -1.0, %v46_v34  ;;  %v70_v37 = vadd.f32 -1.0, %v47_v35 }
  0xd9   :  { %50 = vst [vmem:[#allocation5] sm:$0xff] %v69_v36  ;;  %51 = vst [vmem:[#allocation5 + $0x8] sm:$0xff] %v70_v37 }
  0xda   :  { %128 = shalt.err (!%p125_p9)
}
  0xdb   :  { %63 = dma.vmem_to_hbm [thread:$0]  %s58_s13, 256, %s168_s1, [#allocation4], %s142_s9, %s142_s9, %s143_s10  }
  0xdc   :  { %139 = dma.done.wait [#allocation4], 256  }
  0xdd   :  { %140 = vsyncadd [#allocation4], 4294967040 }
  0xde   :  { %67 = vsyncpa [#allocation3], 1 }
  0xdf   :  { %68 = vsyncpa [#allocation4], 1 }

</bundles_post_ra>
